<compile_context>
chip_gen: v7x
topology: tpu7x:2x2x1
jax: 0.10.0
libtpu: 0.0.40
codegen_flags: <defaults>
</compile_context>

<pallas_src>
import functools

import jax
import jax.numpy as jnp
from jax.experimental import pallas as pl
from jax.experimental.pallas import tpu as pltpu


def _round_up(x, m):
    return -(-x // m) * m


def _student_attn_kernel(len_ref,      # VMEM: (BU, 1) int32  valid-tweet counts
                         emb_ref,      # VMEM: (BU, T, H)     pooled student tweet embs
                         aw_ref,       # VMEM: (1, H)         attn_ff weight (row layout)
                         ab_ref,       # VMEM: (1, 1)         attn_ff bias
                         scores_ref,   # out : (BU, T)        attention scores (0 at pads)
                         uemb_ref):    # out : (BU, H)        user embeddings (f32)
    BU, T, H = emb_ref.shape
    aw = aw_ref[...].astype(jnp.float32)                        # (1, H)
    lane_t = jax.lax.broadcasted_iota(jnp.int32, (BU, T), 1)    # hoisted once

    # ---- attention logits: Linear(H, 1) on the VPU/XLU ----------------------
    # Loop over the (static, tiny) tweet axis so the live vector set stays at
    # (BU, H) instead of materializing a (BU, T, H) f32 intermediate that would
    # spill to VMEM at large user blocks.  T is small, so this is a full unroll.
    s = jnp.zeros((BU, T), jnp.float32)
    for t in range(T):
        e_t = emb_ref[:, t, :].astype(jnp.float32)              # (BU, H)
        col = jnp.sum(e_t * aw, axis=-1, keepdims=True)         # (BU, 1)
        s = s + jnp.where(lane_t == t, col, 0.0)                # place into lane t
    s = s + ab_ref[...].astype(jnp.float32)                     # (BU, T)

    # ---- masked softmax over the first len_real tweets of each user ---------
    # Clamp to >= 1: padded users (len 0) softmax over the zero-padded first
    # slot (scores = [1, 0, ...]) instead of producing NaN; they are sliced
    # off in the wrapper.  Do NOT remove the clamp: it keeps m finite so the
    # padded slots come out as exactly exp(-inf) = 0.
    n_valid = jnp.maximum(len_ref[...], 1)                      # (BU, 1)
    s = jnp.where(lane_t < n_valid, s, -jnp.inf)
    m = jnp.max(s, axis=-1, keepdims=True)                      # (BU, 1), finite
    p = jnp.exp(s - m)                                          # exact 0 at pads
    inv = pl.reciprocal(jnp.sum(p, axis=-1, keepdims=True), approx=True)   # EUP
    scores = p * inv                                            # (BU, T)
    scores_ref[...] = scores

    # ---- user embedding: scores @ emb, accumulated per tweet slot -----------
    uemb = jnp.zeros((BU, H), jnp.float32)
    for t in range(T):
        e_t = emb_ref[:, t, :].astype(jnp.float32)              # (BU, H)
        uemb = uemb + scores[:, t:t + 1] * e_t
    uemb_ref[...] = uemb


@functools.partial(jax.jit, static_argnames=("block_users",))
def student_attn_pallas(emb_student, len_real, attn_w, attn_b, block_users=None):
    """Attention pooling over each user's valid tweets.

    emb_student: (B, T, H) pooled per-tweet student embeddings (f32 or bf16).
    len_real:    (B,) int32 number of valid tweets per user.
    attn_w:      (H, 1) attn_ff weight;  attn_b: (1, 1) attn_ff bias.

    Returns (scores (B, T) f32, user_emb (B, H) f32).
    """
    B, T, H = emb_student.shape
    itemsize = jnp.dtype(emb_student.dtype).itemsize
    lanes_h = _round_up(H, 128)      # last dim pads to 128 lanes in VMEM
    sub_t = _round_up(T, 8)

    # ---- pick the user-block size: the kernel is HBM-bandwidth-bound, so use
    # the biggest block that fits a conservative VMEM budget (works on v5e/v6e
    # 128 MiB and v7x 64 MiB), capped so the grid keeps >= 2 steps when the
    # batch allows it (v7x megacore split over the "parallel" axis).
    if block_users is None:
        budget = 20 << 20                                        # emb double-buffer budget
        fit = max(8, (budget // (2 * sub_t * lanes_h * itemsize)) // 8 * 8)
        bu = min(1024, fit)
        b8 = _round_up(B, 8)
        if b8 >= 16:
            bu = min(bu, _round_up((b8 + 1) // 2, 8))            # grid >= 2
        block_users = max(8, min(bu, b8))
    BU = block_users
    B_pad = _round_up(B, BU)

    if B_pad != B:
        emb_student = jnp.pad(emb_student, ((0, B_pad - B), (0, 0), (0, 0)))
        len_real = jnp.pad(len_real, (0, B_pad - B))             # padded users: len 0

    lens2d = len_real.reshape(B_pad, 1).astype(jnp.int32)
    attn_w_row = attn_w.reshape(1, H).astype(jnp.float32)        # (H, 1) -> (1, H)
    attn_b_2d = attn_b.reshape(1, 1).astype(jnp.float32)

    grid = (B_pad // BU,)

    # Explicit scoped-VMEM limit: double-buffered blocks for every operand
    # (lane/sublane padding included) + headroom; capped below v7x's 64 MiB.
    emb_blk = BU * sub_t * lanes_h * itemsize
    sco_blk = BU * _round_up(T, 128) * 4
    ue_blk = BU * lanes_h * 4
    len_blk = BU * 128 * 4
    vmem_need = 2 * (emb_blk + sco_blk + ue_blk + len_blk) + (1 << 20)
    vmem_limit = int(min(64 << 20, max(vmem_need, 16 << 20)))

    scores, user_emb = pl.pallas_call(
        _student_attn_kernel,
        out_shape=(
            jax.ShapeDtypeStruct((B_pad, T), jnp.float32),
            jax.ShapeDtypeStruct((B_pad, H), jnp.float32),
        ),
        grid=grid,
        in_specs=[
            pl.BlockSpec((BU, 1), lambda g: (g, 0)),             # lengths
            pl.BlockSpec((BU, T, H), lambda g: (g, 0, 0)),       # student embeddings
            pl.BlockSpec((1, H), lambda g: (0, 0)),              # attn_ff weight
            pl.BlockSpec((1, 1), lambda g: (0, 0)),              # attn_ff bias
        ],
        out_specs=[
            pl.BlockSpec((BU, T), lambda g: (g, 0)),
            pl.BlockSpec((BU, H), lambda g: (g, 0)),
        ],
        compiler_params=pltpu.CompilerParams(
            dimension_semantics=("parallel",),                   # split across TCs
            vmem_limit_bytes=vmem_limit,
        ),
    )(lens2d, emb_student, attn_w_row, attn_b_2d)

    return scores[:B], user_emb[:B]


def student_attn_forward(emb_teacher, emb_student, len_real_list,
                         attn_w, attn_b, cls_w, cls_b):
    """Full module forward (glue around the Pallas kernel).

    emb_teacher  : (B, T, Ht) teacher per-tweet embeddings (pass-through)
    emb_student  : (B, T, H)  pooled student per-tweet embeddings
    len_real_list: python list of ints (host-side lengths, like batch_len_real)
    """
    lens = jnp.asarray(len_real_list, dtype=jnp.int32)
    scores_attn, user_emb = student_attn_pallas(emb_student, lens, attn_w, attn_b)

    # Classifier Linear(H, 2), hoisted out of the kernel (degenerate N=2 MXU
    # tile + 2-lane masked store inside; free as a plain XLA matmul here).
    # Dropout is identity in eval mode.
    logits = user_emb.astype(jnp.float32) @ cls_w + cls_b.reshape(1, -1)

    # Ragged concatenations (pure data movement, done host-side like the torch loop).
    emb_student_cat = jnp.concatenate(
        [emb_student[u, :l] for u, l in enumerate(len_real_list)], axis=0)
    emb_teacher_cat = jnp.concatenate(
        [emb_teacher[u, :l] for u, l in enumerate(len_real_list)], axis=0)

    return {
        "logits": logits,
        "emb_teacher": emb_teacher_cat,
        "emb_student": emb_student_cat,
        "scores_attn": scores_attn,
    }


def _reference_forward(emb_student, len_real_list, attn_w, attn_b, cls_w, cls_b):
    """Plain-JAX reference mirroring the PyTorch loop (for correctness check)."""
    logits_l, scores_l, uemb_l = [], [], []
    T = emb_student.shape[1]
    for u, l in enumerate(len_real_list):
        e = emb_student[u, :l].astype(jnp.float32)               # (l, H)
        s = jax.nn.softmax((e @ attn_w)[:, 0] + attn_b[0, 0], axis=-1)
        ue = s @ e
        logits_l.append(ue @ cls_w + cls_b[0])
        scores_l.append(jnp.concatenate([s, jnp.zeros((T - l,), jnp.float32)]))
        uemb_l.append(ue)
    return (jnp.stack(scores_l), jnp.stack(uemb_l), jnp.stack(logits_l))


if __name__ == "__main__":
    B, T, H = 16, 8, 32         # users, max_length_tweet, student hidden dim
    len_real = [8, 5, 3, 8, 1, 7, 2, 6, 4, 8, 5, 3, 7, 2, 6, 1]

    key = jax.random.PRNGKey(0)
    k1, k2, k3, k4, k5, k6 = jax.random.split(key, 6)

    emb_student = jax.random.normal(k1, (B, T, H), dtype=jnp.float32)
    emb_teacher = jax.random.normal(k2, (B, T, H), dtype=jnp.float32)

    # Deterministic "Linear" parameters (attn_ff: H->1, classifier: H->2).
    attn_w = jax.random.normal(k3, (H, 1), dtype=jnp.float32) * 0.1
    attn_b = jax.random.normal(k4, (1, 1), dtype=jnp.float32) * 0.1
    cls_w = jax.random.normal(k5, (H, 2), dtype=jnp.float32) * 0.1
    cls_b = jax.random.normal(k6, (1, 2), dtype=jnp.float32) * 0.1

    out = student_attn_forward(emb_teacher, emb_student, len_real,
                               attn_w, attn_b, cls_w, cls_b)
    jax.block_until_ready(out)

    # Correctness check against a plain-JAX reference of the torch semantics.
    # Tolerance loosened from 1e-5 -> 5e-3 because the softmax denominator now
    # uses the EUP approximate reciprocal.
    ref_scores, ref_uemb, ref_logits = _reference_forward(
        emb_student, len_real, attn_w, attn_b, cls_w, cls_b)
    assert jnp.allclose(out["scores_attn"], ref_scores, atol=5e-3), "scores mismatch"
    assert jnp.allclose(out["logits"], ref_logits, atol=5e-3), "logits mismatch"
    assert out["emb_student"].shape == (sum(len_real), H)
    assert out["emb_teacher"].shape == (sum(len_real), H)

    # bf16 streaming path: halves HBM read traffic, f32 accumulation in-kernel.
    lens = jnp.asarray(len_real, dtype=jnp.int32)
    sc16, ue16 = student_attn_pallas(emb_student.astype(jnp.bfloat16), lens,
                                     attn_w, attn_b)
    jax.block_until_ready((sc16, ue16))
    assert jnp.allclose(sc16, ref_scores, atol=2e-2), "bf16 scores mismatch"
    assert jnp.allclose(ue16, ref_uemb, atol=5e-2), "bf16 user_emb mismatch"

    print("KERNEL_OK")
</pallas_src>

<mosaic_0001>
module attributes {stable_mosaic.version = 11 : i64} {
  func.func @_student_attn_kernel(%arg0: i32, %arg1: memref<8x1xi32, #tpu.memory_space<vmem>>, %arg2: memref<8x8x32xf32, #tpu.memory_space<vmem>>, %arg3: memref<1x32xf32, #tpu.memory_space<vmem>>, %arg4: memref<1x1xf32, #tpu.memory_space<vmem>>, %arg5: memref<8x8xf32, #tpu.memory_space<vmem>>, %arg6: memref<8x32xf32, #tpu.memory_space<vmem>>) attributes {dimension_semantics = [#tpu.dimension_semantics<parallel>], iteration_bounds = array<i64: 2>, scalar_prefetch = 0 : i64, scratch_operands = 0 : i64, tpu.core_type = #tpu.core_type<tc>, window_params = [{transform_indices = @transform_0, window_bounds = array<i64: 8, 1>}, {transform_indices = @transform_1, window_bounds = array<i64: 8, 8, 32>}, {pipeline_mode = #tpu.pipeline_mode<synchronous>, transform_indices = @transform_2, window_bounds = array<i64: 1, 32>}, {pipeline_mode = #tpu.pipeline_mode<synchronous>, transform_indices = @transform_3, window_bounds = array<i64: 1, 1>}, {transform_indices = @transform_4, window_bounds = array<i64: 8, 8>}, {transform_indices = @transform_5, window_bounds = array<i64: 8, 32>}]} {
    %c0 = arith.constant 0 : index
    %c0_0 = arith.constant 0 : index
    %0 = vector.load %arg3[%c0, %c0_0] : memref<1x32xf32, #tpu.memory_space<vmem>>, vector<1x32xf32>
    %1 = tpu.iota {dimensions = array<i32: 1>} : vector<8x8xi32>
    %cst = arith.constant 0.000000e+00 : f32
    %2 = vector.broadcast %cst : f32 to vector<8x8xf32>
    %c0_1 = arith.constant 0 : index
    %c0_2 = arith.constant 0 : index
    %c0_3 = arith.constant 0 : index
    %3 = vector.load %arg2[%c0_1, %c0_2, %c0_3] : memref<8x8x32xf32, #tpu.memory_space<vmem>>, vector<8x1x32xf32>
    %4 = vector.shape_cast %3 : vector<8x1x32xf32> to vector<8x32xf32>
    %5 = vector.broadcast %0 : vector<1x32xf32> to vector<8x32xf32>
    %6 = arith.mulf %4, %5 : vector<8x32xf32>
    %cst_4 = arith.constant dense<0.000000e+00> : vector<8xf32>
    %7 = vector.multi_reduction <add>, %6, %cst_4 [1] : vector<8x32xf32> to vector<8xf32>
    %8 = vector.shape_cast %7 : vector<8xf32> to vector<8x1xf32>
    %c0_i32 = arith.constant 0 : i32
    %9 = vector.broadcast %c0_i32 : i32 to vector<8x8xi32>
    %10 = arith.cmpi eq, %1, %9 : vector<8x8xi32>
    %cst_5 = arith.constant 0.000000e+00 : f32
    %11 = vector.shape_cast %8 : vector<8x1xf32> to vector<8x1xf32>
    %12 = vector.broadcast %11 : vector<8x1xf32> to vector<8x8xf32>
    %13 = vector.broadcast %cst_5 : f32 to vector<8x8xf32>
    %14 = arith.select %10, %12, %13 : vector<8x8xi1>, vector<8x8xf32>
    %15 = arith.addf %2, %14 : vector<8x8xf32>
    %c0_6 = arith.constant 0 : index
    %c1 = arith.constant 1 : index
    %c0_7 = arith.constant 0 : index
    %16 = vector.load %arg2[%c0_6, %c1, %c0_7] : memref<8x8x32xf32, #tpu.memory_space<vmem>>, vector<8x1x32xf32>
    %17 = vector.shape_cast %16 : vector<8x1x32xf32> to vector<8x32xf32>
    %18 = vector.broadcast %0 : vector<1x32xf32> to vector<8x32xf32>
    %19 = arith.mulf %17, %18 : vector<8x32xf32>
    %cst_8 = arith.constant dense<0.000000e+00> : vector<8xf32>
    %20 = vector.multi_reduction <add>, %19, %cst_8 [1] : vector<8x32xf32> to vector<8xf32>
    %21 = vector.shape_cast %20 : vector<8xf32> to vector<8x1xf32>
    %c1_i32 = arith.constant 1 : i32
    %22 = vector.broadcast %c1_i32 : i32 to vector<8x8xi32>
    %23 = arith.cmpi eq, %1, %22 : vector<8x8xi32>
    %cst_9 = arith.constant 0.000000e+00 : f32
    %24 = vector.shape_cast %21 : vector<8x1xf32> to vector<8x1xf32>
    %25 = vector.broadcast %24 : vector<8x1xf32> to vector<8x8xf32>
    %26 = vector.broadcast %cst_9 : f32 to vector<8x8xf32>
    %27 = arith.select %23, %25, %26 : vector<8x8xi1>, vector<8x8xf32>
    %28 = arith.addf %15, %27 : vector<8x8xf32>
    %c0_10 = arith.constant 0 : index
    %c2 = arith.constant 2 : index
    %c0_11 = arith.constant 0 : index
    %29 = vector.load %arg2[%c0_10, %c2, %c0_11] : memref<8x8x32xf32, #tpu.memory_space<vmem>>, vector<8x1x32xf32>
    %30 = vector.shape_cast %29 : vector<8x1x32xf32> to vector<8x32xf32>
    %31 = vector.broadcast %0 : vector<1x32xf32> to vector<8x32xf32>
    %32 = arith.mulf %30, %31 : vector<8x32xf32>
    %cst_12 = arith.constant dense<0.000000e+00> : vector<8xf32>
    %33 = vector.multi_reduction <add>, %32, %cst_12 [1] : vector<8x32xf32> to vector<8xf32>
    %34 = vector.shape_cast %33 : vector<8xf32> to vector<8x1xf32>
    %c2_i32 = arith.constant 2 : i32
    %35 = vector.broadcast %c2_i32 : i32 to vector<8x8xi32>
    %36 = arith.cmpi eq, %1, %35 : vector<8x8xi32>
    %cst_13 = arith.constant 0.000000e+00 : f32
    %37 = vector.shape_cast %34 : vector<8x1xf32> to vector<8x1xf32>
    %38 = vector.broadcast %37 : vector<8x1xf32> to vector<8x8xf32>
    %39 = vector.broadcast %cst_13 : f32 to vector<8x8xf32>
    %40 = arith.select %36, %38, %39 : vector<8x8xi1>, vector<8x8xf32>
    %41 = arith.addf %28, %40 : vector<8x8xf32>
    %c0_14 = arith.constant 0 : index
    %c3 = arith.constant 3 : index
    %c0_15 = arith.constant 0 : index
    %42 = vector.load %arg2[%c0_14, %c3, %c0_15] : memref<8x8x32xf32, #tpu.memory_space<vmem>>, vector<8x1x32xf32>
    %43 = vector.shape_cast %42 : vector<8x1x32xf32> to vector<8x32xf32>
    %44 = vector.broadcast %0 : vector<1x32xf32> to vector<8x32xf32>
    %45 = arith.mulf %43, %44 : vector<8x32xf32>
    %cst_16 = arith.constant dense<0.000000e+00> : vector<8xf32>
    %46 = vector.multi_reduction <add>, %45, %cst_16 [1] : vector<8x32xf32> to vector<8xf32>
    %47 = vector.shape_cast %46 : vector<8xf32> to vector<8x1xf32>
    %c3_i32 = arith.constant 3 : i32
    %48 = vector.broadcast %c3_i32 : i32 to vector<8x8xi32>
    %49 = arith.cmpi eq, %1, %48 : vector<8x8xi32>
    %cst_17 = arith.constant 0.000000e+00 : f32
    %50 = vector.shape_cast %47 : vector<8x1xf32> to vector<8x1xf32>
    %51 = vector.broadcast %50 : vector<8x1xf32> to vector<8x8xf32>
    %52 = vector.broadcast %cst_17 : f32 to vector<8x8xf32>
    %53 = arith.select %49, %51, %52 : vector<8x8xi1>, vector<8x8xf32>
    %54 = arith.addf %41, %53 : vector<8x8xf32>
    %c0_18 = arith.constant 0 : index
    %c4 = arith.constant 4 : index
    %c0_19 = arith.constant 0 : index
    %55 = vector.load %arg2[%c0_18, %c4, %c0_19] : memref<8x8x32xf32, #tpu.memory_space<vmem>>, vector<8x1x32xf32>
    %56 = vector.shape_cast %55 : vector<8x1x32xf32> to vector<8x32xf32>
    %57 = vector.broadcast %0 : vector<1x32xf32> to vector<8x32xf32>
    %58 = arith.mulf %56, %57 : vector<8x32xf32>
    %cst_20 = arith.constant dense<0.000000e+00> : vector<8xf32>
    %59 = vector.multi_reduction <add>, %58, %cst_20 [1] : vector<8x32xf32> to vector<8xf32>
    %60 = vector.shape_cast %59 : vector<8xf32> to vector<8x1xf32>
    %c4_i32 = arith.constant 4 : i32
    %61 = vector.broadcast %c4_i32 : i32 to vector<8x8xi32>
    %62 = arith.cmpi eq, %1, %61 : vector<8x8xi32>
    %cst_21 = arith.constant 0.000000e+00 : f32
    %63 = vector.shape_cast %60 : vector<8x1xf32> to vector<8x1xf32>
    %64 = vector.broadcast %63 : vector<8x1xf32> to vector<8x8xf32>
    %65 = vector.broadcast %cst_21 : f32 to vector<8x8xf32>
    %66 = arith.select %62, %64, %65 : vector<8x8xi1>, vector<8x8xf32>
    %67 = arith.addf %54, %66 : vector<8x8xf32>
    %c0_22 = arith.constant 0 : index
    %c5 = arith.constant 5 : index
    %c0_23 = arith.constant 0 : index
    %68 = vector.load %arg2[%c0_22, %c5, %c0_23] : memref<8x8x32xf32, #tpu.memory_space<vmem>>, vector<8x1x32xf32>
    %69 = vector.shape_cast %68 : vector<8x1x32xf32> to vector<8x32xf32>
    %70 = vector.broadcast %0 : vector<1x32xf32> to vector<8x32xf32>
    %71 = arith.mulf %69, %70 : vector<8x32xf32>
    %cst_24 = arith.constant dense<0.000000e+00> : vector<8xf32>
    %72 = vector.multi_reduction <add>, %71, %cst_24 [1] : vector<8x32xf32> to vector<8xf32>
    %73 = vector.shape_cast %72 : vector<8xf32> to vector<8x1xf32>
    %c5_i32 = arith.constant 5 : i32
    %74 = vector.broadcast %c5_i32 : i32 to vector<8x8xi32>
    %75 = arith.cmpi eq, %1, %74 : vector<8x8xi32>
    %cst_25 = arith.constant 0.000000e+00 : f32
    %76 = vector.shape_cast %73 : vector<8x1xf32> to vector<8x1xf32>
    %77 = vector.broadcast %76 : vector<8x1xf32> to vector<8x8xf32>
    %78 = vector.broadcast %cst_25 : f32 to vector<8x8xf32>
    %79 = arith.select %75, %77, %78 : vector<8x8xi1>, vector<8x8xf32>
    %80 = arith.addf %67, %79 : vector<8x8xf32>
    %c0_26 = arith.constant 0 : index
    %c6 = arith.constant 6 : index
    %c0_27 = arith.constant 0 : index
    %81 = vector.load %arg2[%c0_26, %c6, %c0_27] : memref<8x8x32xf32, #tpu.memory_space<vmem>>, vector<8x1x32xf32>
    %82 = vector.shape_cast %81 : vector<8x1x32xf32> to vector<8x32xf32>
    %83 = vector.broadcast %0 : vector<1x32xf32> to vector<8x32xf32>
    %84 = arith.mulf %82, %83 : vector<8x32xf32>
    %cst_28 = arith.constant dense<0.000000e+00> : vector<8xf32>
    %85 = vector.multi_reduction <add>, %84, %cst_28 [1] : vector<8x32xf32> to vector<8xf32>
    %86 = vector.shape_cast %85 : vector<8xf32> to vector<8x1xf32>
    %c6_i32 = arith.constant 6 : i32
    %87 = vector.broadcast %c6_i32 : i32 to vector<8x8xi32>
    %88 = arith.cmpi eq, %1, %87 : vector<8x8xi32>
    %cst_29 = arith.constant 0.000000e+00 : f32
    %89 = vector.shape_cast %86 : vector<8x1xf32> to vector<8x1xf32>
    %90 = vector.broadcast %89 : vector<8x1xf32> to vector<8x8xf32>
    %91 = vector.broadcast %cst_29 : f32 to vector<8x8xf32>
    %92 = arith.select %88, %90, %91 : vector<8x8xi1>, vector<8x8xf32>
    %93 = arith.addf %80, %92 : vector<8x8xf32>
    %c0_30 = arith.constant 0 : index
    %c7 = arith.constant 7 : index
    %c0_31 = arith.constant 0 : index
    %94 = vector.load %arg2[%c0_30, %c7, %c0_31] : memref<8x8x32xf32, #tpu.memory_space<vmem>>, vector<8x1x32xf32>
    %95 = vector.shape_cast %94 : vector<8x1x32xf32> to vector<8x32xf32>
    %96 = vector.broadcast %0 : vector<1x32xf32> to vector<8x32xf32>
    %97 = arith.mulf %95, %96 : vector<8x32xf32>
    %cst_32 = arith.constant dense<0.000000e+00> : vector<8xf32>
    %98 = vector.multi_reduction <add>, %97, %cst_32 [1] : vector<8x32xf32> to vector<8xf32>
    %99 = vector.shape_cast %98 : vector<8xf32> to vector<8x1xf32>
    %c7_i32 = arith.constant 7 : i32
    %100 = vector.broadcast %c7_i32 : i32 to vector<8x8xi32>
    %101 = arith.cmpi eq, %1, %100 : vector<8x8xi32>
    %cst_33 = arith.constant 0.000000e+00 : f32
    %102 = vector.shape_cast %99 : vector<8x1xf32> to vector<8x1xf32>
    %103 = vector.broadcast %102 : vector<8x1xf32> to vector<8x8xf32>
    %104 = vector.broadcast %cst_33 : f32 to vector<8x8xf32>
    %105 = arith.select %101, %103, %104 : vector<8x8xi1>, vector<8x8xf32>
    %106 = arith.addf %93, %105 : vector<8x8xf32>
    %c0_34 = arith.constant 0 : index
    %c0_35 = arith.constant 0 : index
    %107 = vector.load %arg4[%c0_34, %c0_35] : memref<1x1xf32, #tpu.memory_space<vmem>>, vector<1x1xf32>
    %108 = vector.broadcast %107 : vector<1x1xf32> to vector<8x8xf32>
    %109 = arith.addf %106, %108 : vector<8x8xf32>
    %c0_36 = arith.constant 0 : index
    %c0_37 = arith.constant 0 : index
    %110 = vector.load %arg1[%c0_36, %c0_37] : memref<8x1xi32, #tpu.memory_space<vmem>>, vector<8x1xi32>
    %c1_i32_38 = arith.constant 1 : i32
    %111 = vector.broadcast %c1_i32_38 : i32 to vector<8x1xi32>
    %112 = arith.maxsi %110, %111 : vector<8x1xi32>
    %113 = vector.broadcast %112 : vector<8x1xi32> to vector<8x8xi32>
    %114 = arith.cmpi slt, %1, %113 : vector<8x8xi32>
    %cst_39 = arith.constant 0xFF800000 : f32
    %115 = vector.broadcast %cst_39 : f32 to vector<8x8xf32>
    %116 = arith.select %114, %109, %115 : vector<8x8xi1>, vector<8x8xf32>
    %cst_40 = arith.constant dense<0xFF800000> : vector<8xf32>
    %117 = vector.multi_reduction <maximumf>, %116, %cst_40 [1] : vector<8x8xf32> to vector<8xf32>
    %118 = vector.shape_cast %117 : vector<8xf32> to vector<8x1xf32>
    %119 = vector.broadcast %118 : vector<8x1xf32> to vector<8x8xf32>
    %120 = arith.subf %116, %119 : vector<8x8xf32>
    %121 = math.exp %120 : vector<8x8xf32>
    %cst_41 = arith.constant dense<0.000000e+00> : vector<8xf32>
    %122 = vector.multi_reduction <add>, %121, %cst_41 [1] : vector<8x8xf32> to vector<8xf32>
    %123 = vector.shape_cast %122 : vector<8xf32> to vector<8x1xf32>
    %124 = tpu.reciprocal %123 {approx = true} : vector<8x1xf32> -> vector<8x1xf32>
    %125 = vector.broadcast %124 : vector<8x1xf32> to vector<8x8xf32>
    %126 = arith.mulf %121, %125 : vector<8x8xf32>
    %c0_42 = arith.constant 0 : index
    %c0_43 = arith.constant 0 : index
    %127 = vector.load %arg5[%c0_42, %c0_43] : memref<8x8xf32, #tpu.memory_space<vmem>>, vector<8x8xf32>
    tpu.vector_store %arg5[%c0_42, %c0_43], %126 {strides = array<i32>} : memref<8x8xf32, #tpu.memory_space<vmem>>, vector<8x8xf32>,
    %cst_44 = arith.constant 0.000000e+00 : f32
    %128 = vector.broadcast %cst_44 : f32 to vector<8x32xf32>
    %c0_45 = arith.constant 0 : index
    %c0_46 = arith.constant 0 : index
    %c0_47 = arith.constant 0 : index
    %129 = vector.load %arg2[%c0_45, %c0_46, %c0_47] : memref<8x8x32xf32, #tpu.memory_space<vmem>>, vector<8x1x32xf32>
    %130 = vector.shape_cast %129 : vector<8x1x32xf32> to vector<8x32xf32>
    %131 = vector.extract_strided_slice %126 {offsets = [0, 0], sizes = [8, 1], strides = [1, 1]} : vector<8x8xf32> to vector<8x1xf32>
    %132 = vector.broadcast %131 : vector<8x1xf32> to vector<8x32xf32>
    %133 = arith.mulf %132, %130 : vector<8x32xf32>
    %134 = arith.addf %128, %133 : vector<8x32xf32>
    %c0_48 = arith.constant 0 : index
    %c1_49 = arith.constant 1 : index
    %c0_50 = arith.constant 0 : index
    %135 = vector.load %arg2[%c0_48, %c1_49, %c0_50] : memref<8x8x32xf32, #tpu.memory_space<vmem>>, vector<8x1x32xf32>
    %136 = vector.shape_cast %135 : vector<8x1x32xf32> to vector<8x32xf32>
    %137 = vector.extract_strided_slice %126 {offsets = [0, 1], sizes = [8, 1], strides = [1, 1]} : vector<8x8xf32> to vector<8x1xf32>
    %138 = vector.broadcast %137 : vector<8x1xf32> to vector<8x32xf32>
    %139 = arith.mulf %138, %136 : vector<8x32xf32>
    %140 = arith.addf %134, %139 : vector<8x32xf32>
    %c0_51 = arith.constant 0 : index
    %c2_52 = arith.constant 2 : index
    %c0_53 = arith.constant 0 : index
    %141 = vector.load %arg2[%c0_51, %c2_52, %c0_53] : memref<8x8x32xf32, #tpu.memory_space<vmem>>, vector<8x1x32xf32>
    %142 = vector.shape_cast %141 : vector<8x1x32xf32> to vector<8x32xf32>
    %143 = vector.extract_strided_slice %126 {offsets = [0, 2], sizes = [8, 1], strides = [1, 1]} : vector<8x8xf32> to vector<8x1xf32>
    %144 = vector.broadcast %143 : vector<8x1xf32> to vector<8x32xf32>
    %145 = arith.mulf %144, %142 : vector<8x32xf32>
    %146 = arith.addf %140, %145 : vector<8x32xf32>
    %c0_54 = arith.constant 0 : index
    %c3_55 = arith.constant 3 : index
    %c0_56 = arith.constant 0 : index
    %147 = vector.load %arg2[%c0_54, %c3_55, %c0_56] : memref<8x8x32xf32, #tpu.memory_space<vmem>>, vector<8x1x32xf32>
    %148 = vector.shape_cast %147 : vector<8x1x32xf32> to vector<8x32xf32>
    %149 = vector.extract_strided_slice %126 {offsets = [0, 3], sizes = [8, 1], strides = [1, 1]} : vector<8x8xf32> to vector<8x1xf32>
    %150 = vector.broadcast %149 : vector<8x1xf32> to vector<8x32xf32>
    %151 = arith.mulf %150, %148 : vector<8x32xf32>
    %152 = arith.addf %146, %151 : vector<8x32xf32>
    %c0_57 = arith.constant 0 : index
    %c4_58 = arith.constant 4 : index
    %c0_59 = arith.constant 0 : index
    %153 = vector.load %arg2[%c0_57, %c4_58, %c0_59] : memref<8x8x32xf32, #tpu.memory_space<vmem>>, vector<8x1x32xf32>
    %154 = vector.shape_cast %153 : vector<8x1x32xf32> to vector<8x32xf32>
    %155 = vector.extract_strided_slice %126 {offsets = [0, 4], sizes = [8, 1], strides = [1, 1]} : vector<8x8xf32> to vector<8x1xf32>
    %156 = vector.broadcast %155 : vector<8x1xf32> to vector<8x32xf32>
    %157 = arith.mulf %156, %154 : vector<8x32xf32>
    %158 = arith.addf %152, %157 : vector<8x32xf32>
    %c0_60 = arith.constant 0 : index
    %c5_61 = arith.constant 5 : index
    %c0_62 = arith.constant 0 : index
    %159 = vector.load %arg2[%c0_60, %c5_61, %c0_62] : memref<8x8x32xf32, #tpu.memory_space<vmem>>, vector<8x1x32xf32>
    %160 = vector.shape_cast %159 : vector<8x1x32xf32> to vector<8x32xf32>
    %161 = vector.extract_strided_slice %126 {offsets = [0, 5], sizes = [8, 1], strides = [1, 1]} : vector<8x8xf32> to vector<8x1xf32>
    %162 = vector.broadcast %161 : vector<8x1xf32> to vector<8x32xf32>
    %163 = arith.mulf %162, %160 : vector<8x32xf32>
    %164 = arith.addf %158, %163 : vector<8x32xf32>
    %c0_63 = arith.constant 0 : index
    %c6_64 = arith.constant 6 : index
    %c0_65 = arith.constant 0 : index
    %165 = vector.load %arg2[%c0_63, %c6_64, %c0_65] : memref<8x8x32xf32, #tpu.memory_space<vmem>>, vector<8x1x32xf32>
    %166 = vector.shape_cast %165 : vector<8x1x32xf32> to vector<8x32xf32>
    %167 = vector.extract_strided_slice %126 {offsets = [0, 6], sizes = [8, 1], strides = [1, 1]} : vector<8x8xf32> to vector<8x1xf32>
    %168 = vector.broadcast %167 : vector<8x1xf32> to vector<8x32xf32>
    %169 = arith.mulf %168, %166 : vector<8x32xf32>
    %170 = arith.addf %164, %169 : vector<8x32xf32>
    %c0_66 = arith.constant 0 : index
    %c7_67 = arith.constant 7 : index
    %c0_68 = arith.constant 0 : index
    %171 = vector.load %arg2[%c0_66, %c7_67, %c0_68] : memref<8x8x32xf32, #tpu.memory_space<vmem>>, vector<8x1x32xf32>
    %172 = vector.shape_cast %171 : vector<8x1x32xf32> to vector<8x32xf32>
    %173 = vector.extract_strided_slice %126 {offsets = [0, 7], sizes = [8, 1], strides = [1, 1]} : vector<8x8xf32> to vector<8x1xf32>
    %174 = vector.broadcast %173 : vector<8x1xf32> to vector<8x32xf32>
    %175 = arith.mulf %174, %172 : vector<8x32xf32>
    %176 = arith.addf %170, %175 : vector<8x32xf32>
    %c0_69 = arith.constant 0 : index
    %c0_70 = arith.constant 0 : index
    %177 = vector.load %arg6[%c0_69, %c0_70] : memref<8x32xf32, #tpu.memory_space<vmem>>, vector<8x32xf32>
    tpu.vector_store %arg6[%c0_69, %c0_70], %176 {strides = array<i32>} : memref<8x32xf32, #tpu.memory_space<vmem>>, vector<8x32xf32>,
    return
  }
  func.func @transform_0(%arg0: i32) -> (i32, i32) {
    %c0_i32 = arith.constant 0 : i32
    %c0_i32_0 = arith.constant 0 : i32
    return %arg0, %c0_i32 : i32, i32
  }
  func.func @transform_1(%arg0: i32) -> (i32, i32, i32) {
    %c0_i32 = arith.constant 0 : i32
    %c0_i32_0 = arith.constant 0 : i32
    %c0_i32_1 = arith.constant 0 : i32
    return %arg0, %c0_i32, %c0_i32_0 : i32, i32, i32
  }
  func.func @transform_2(%arg0: i32) -> (i32, i32) {
    %c0_i32 = arith.constant 0 : i32
    %c0_i32_0 = arith.constant 0 : i32
    %c0_i32_1 = arith.constant 0 : i32
    return %c0_i32, %c0_i32_0 : i32, i32
  }
  func.func @transform_3(%arg0: i32) -> (i32, i32) {
    %c0_i32 = arith.constant 0 : i32
    %c0_i32_0 = arith.constant 0 : i32
    %c0_i32_1 = arith.constant 0 : i32
    return %c0_i32, %c0_i32_0 : i32, i32
  }
  func.func @transform_4(%arg0: i32) -> (i32, i32) {
    %c0_i32 = arith.constant 0 : i32
    %c0_i32_0 = arith.constant 0 : i32
    return %arg0, %c0_i32 : i32, i32
  }
  func.func @transform_5(%arg0: i32) -> (i32, i32) {
    %c0_i32 = arith.constant 0 : i32
    %c0_i32_0 = arith.constant 0 : i32
    return %arg0, %c0_i32 : i32, i32
  }
}

</mosaic_0001>

<bundles_post_ra>
// kernel: student_attn_pallas.1
= control target key start
LH: loop header
LB: loop body
LE: loop exit
PB: predicated region body
PF: predicated region fallthrough
CT: control target
= control target key end

     0   :  { %s1865_s0 = inlined_call_operand.vmem [shape: s32[16,1], index: 0, kind: input, shape index: {}]   ;;  %s1866_s1 = inlined_call_operand.hbm [shape: f32[16,8,32], index: 1, kind: input, shape index: {}]   ;;  %s1867_s2 = inlined_call_operand.vmem [shape: f32[1,32], index: 2, kind: input, shape index: {}]   ;;  %s1868_s3 = inlined_call_operand.<no memory space> [shape: f32[1,1], index: 3, kind: input, shape index: {}]   ;;  %s1869_s4 = inlined_call_operand.vmem [shape: f32[16,8], index: 4, kind: output, shape index: {0}]   ;;  %s1870_s5 = inlined_call_operand.hbm [shape: f32[16,32], index: 5, kind: output, shape index: {1}]  }
   0x1   :  { %v11_v0 = vstv %s1868_s3 }
   0x2   :  { %12 = vst [vmem:[#allocation2] sm:$0x1] %v11_v0 }
   0x3   :  { %13 = vsyncpa [#allocation4], 0 }
   0x4   :  { %15 = vsyncpa [#allocation4 + $0x1], 0 }
   0x5   :  { %16 = vsyncpa [#allocation5], 0 }
   0x6   :  { %18 = vsyncpa [#allocation5 + $0x1], 0  ;;  %s1339_s20 = smov 0   ;;  %s1341_s21 = smov 0  }
   0x7   :  { %s1343_s22 = smov 0   ;;  %s1345_s23 = smov 0  }
   0x8 LB: > { %s1360_s3 = sadd.s32 4294967295, %s1292_s23   ;;  %s1108_s24 = sadd.s32 4294967294, %s1292_s23   ;;  %s1292_s23 = sphi %s1345_s23, %s1883_s23   ;;  %s1288_s22 = sphi %s1343_s22, %s1882_s22   ;;  %s1284_s21 = sphi %s1341_s21, %s1881_s21   ;;  %s1280_s20 = sphi %s1339_s20, %s1880_s20  }
   0x9   : > { %s1364_s25 = sadd.s32 1, %s1292_s23   ;;  %s57_s26 = sadd.s32 1, %s1288_s22 }
   0xa   : > { %s54_s27 = ssub.s32 %s1292_s23, %s1364_s25  ;;  %p64_p0 = scmp.ne.s32.totalorder %s1288_s22, %s1284_s21 }
   0xb   : > { %p55_p1 = scmp.eq.s32.totalorder %s54_s27, 0  ;;  %p65_p2 = scmp.eq.s32.totalorder %s1292_s23, 0 }
   0xc   : > { %p70_p3 = scmp.ne.s32.totalorder %s1284_s21, %s1280_s20  ;;  %p71_p4 = scmp.eq.s32.totalorder %s1360_s3, 0 }
   0xd   : > { %s1376_s28 = scalar_select %p55_p1, %s1288_s22, %s57_s26  }
   0xe   : > { %p1378_p5 = por %p65_p2, %p64_p0  ;;  %p1382_p6 = por %p71_p4, %p70_p3 }
   0xf   : > { %p162_p7 = scmp.eq.s32.totalorder %s1360_s3, 1  ;;  %p168_p8 = scmp.eq.s32.totalorder %s1108_s24, 1 }
  0x10   : > { %p1138_p10 = scmp.lt.s32.totalorder %s1292_s23, 2  ;;  %s201_s8 = sand.u32 1, %s1288_s22  }
  0x11   : > { %p1389_p11 = por %p162_p7, %p64_p0  ;;  %p1393_p12 = por %p168_p8, %p70_p3 }
  0x12   : > { %s1125_s9 = sshll.u32 %s1292_s23, 10  ;;  %s1111_s10 = sshll.u32 %s201_s8, 6 }
  0x13   : > { %s1874_s6 = scalar_select %p1389_p11, 1, 0 }
  0x14   : > { %s1875_s7 = scalar_select %p1393_p12, 1, 0 }
  0x15   : > { %s1402_s13 = scalar_lea.hbm %s1866_s1, %s1125_s9  ;;  %s205_s14 = scalar_lea.vmem [#allocation3], %s1111_s10 }
  0x16   : > { %s212_s15 = sshll.u32 %s205_s14, 4  ;;  %p1406_p13 = pnand %p1138_p10, %p1378_p5  ;;  %s1410_s15 = int_to_ptr.vmem [resolvable:$true] %s212_s15 }
  0x17   : > { %s1412_s17 = scalar_lea.sflag [#allocation4], %s201_s8  ;;  %s1196_s18 = scalar_lea.hbm %s1402_s13, 1024 }
  0x18   : > { %p1197_p0 = scmp.ne.s32.totalorder %s1402_s13, %s1196_s18  ;;  %p1198_p1 = pneg %p1406_p13 }
  0x19   : > { %s1201_s26 = scalar_lea.hbm %s1866_s1, 2048  ;;  %p1202_p4 = scmp.lt.u32.totalorder %s1402_s13, %s1866_s1 }
  0x1a   : > { %p1199_p2 = pnand %p1198_p1, %p1197_p0  ;;  %p1203_p5 = scmp.lt.u32.totalorder %s1201_s26, %s1196_s18 }
  0x1b   : > { %p1205_p8 = scmp.lt.u32.totalorder %s1196_s18, %s1402_s13 }
  0x1c   : > { %p1200_p3 = pneg %p1199_p2  ;;  %p1204_p7 = por %p1203_p5, %p1202_p4 }
  0x1e   : > { %p1206_p10 = por %p1205_p8, %p1204_p7 }
  0x20   : > { %p1207_p9 = pnand %p1206_p10, %p1200_p3 }
  0x22   : > { %1210 = shalt.err (!%p1207_p9)
}
  0x23   : > { %s1211_s8 = scalar_lea.vmem %s1410_s15, 1024  ;;  %s1294_s9 = smov [#allocation3]  }
  0x24   : > { %p1212_p0 = scmp.ne.s32.totalorder %s1410_s15, %s1211_s8  ;;  %s1216_s10 = sshll.u32 %s1294_s9, 4  ;;  %s1217_s10 = int_to_ptr.vmem [resolvable:$false] %s1216_s10 }
  0x25   : > { %s1218_s11 = scalar_lea.vmem %s1217_s10, 2048  ;;  %p1219_p11 = scmp.lt.s32.totalorder %s1410_s15, %s1217_s10 }
  0x26   : > { %p1214_p2 = pnand %p1212_p0, %p1198_p1  ;;  %p1220_p4 = scmp.lt.s32.totalorder %s1218_s11, %s1211_s8 }
  0x28   : > { %p1215_p12 = pneg %p1214_p2  ;;  %p1221_p5 = por %p1220_p4, %p1219_p11 }
  0x2a   : > { %p1222_p7 = pnand %p1221_p5, %p1215_p12 }
  0x2c   : > { %1225 = shalt.err (!%p1222_p7)
}
  0x2d   : > { %s1295_s12 = smov 128   ;;  %s1296_s14 = smov 8  }
  0x2e   : > { %1133 = dma.hbm_to_vmem [thread:$0]  (!%p1406_p13), %s1402_s13, 1024, %s1410_s15, %s1412_s17, %s1295_s12, %s1295_s12, %s1296_s14  }
  0x2f   : > { %p1114_p9 = scmp.ge.s32.totalorder %s1292_s23, 1  ;;  %p220_p1 = scmp.lt.s32.totalorder %s1292_s23, 3 }
  0x31   : > { %p221_p3 = pnand %p1114_p9, %p220_p1 }
  0x32   : > { %s1443_s18 = sand.u32 (!%p221_p3), 1, %s1284_s21  }
  0x33   : > { %224 = sbr.rel (%p221_p3) target bundleno = 752 (0x2f0), region = 36  ;;  %s1115_s19 = sshll.u32 (!%p221_p3), %s1443_s18, 6 }
  0x34   : > { %s227_s24 = scalar_lea.sflag (!%p221_p3), [#allocation4], %s1443_s18  ;;  %s1447_s26 = scalar_lea.vmem (!%p221_p3), [#allocation3], %s1115_s19 }
  0x3a   : > { %1271 = dma.done.wait (%p1382_p6), %s227_s24, 1024  }
  0x3b   : > { %1273 = vsyncadd (%p1382_p6), %s227_s24, 4294966272  ;;  %v1297_v1 = vmov 0   ;;  %vm308_vm0 = vcmask 1041409   ;;  %vm311_vm1 = vcmask 1042434   ;;  %vm314_vm2 = vcmask 1043459   ;;  %p265_p6 = scmp.lt.s32.totalorder %s1360_s3, 1 }
  0x3c   : > { %1182 = vset.pattern.permute.xlu0 %v1297_v1  ;;  %1183 = vset.pattern.permute.xlu1 %v1297_v1  ;;  %vm317_vm3 = vcmask 1044484   ;;  %vm320_vm4 = vcmask 1045509   ;;  %vm323_vm5 = vcmask 1046534   ;;  %v1456_v2 = vld [vmem:[%s1867_s2] ss:$0 sm:$0xff]  ;;  %vm326_vm6 = vcmask 1047559  }
  0x3d   : > { %v277_v3 = vld [vmem:[%s1447_s26] sm:$0x1]  ;;  %v278_v4 = vld [vmem:[%s1447_s26 + $0x8] sm:$0x1]  ;;  %v279_v5 = vld [vmem:[%s1447_s26 + $0x10] sm:$0x1] }
  0x3e   : > { %v280_v6 = vld [vmem:[%s1447_s26 + $0x18] sm:$0x1]  ;;  %v281_v7 = vld [vmem:[%s1447_s26 + $0x20] sm:$0x1]  ;;  %v291_v8 = vmul.f32 %v1456_v2, %v277_v3  ;;  %v292_v9 = vmul.f32 %v1456_v2, %v278_v4  ;;  %vm329_vm7 = vcmask 261120   ;;  %v293_v13 = vmul.f32 %v1456_v2, %v279_v5  ;;  %s1651_s15 = scalar_select %p265_p6, %s1360_s3, 1 }
  0x3f   : > { %v282_v10 = vld [vmem:[%s1447_s26 + $0x28] sm:$0x1]  ;;  %v283_v11 = vld [vmem:[%s1447_s26 + $0x30] sm:$0x1]  ;;  %v284_v12 = vld [vmem:[%s1447_s26 + $0x38] sm:$0x1]  ;;  %v294_v14 = vmul.f32 %v1456_v2, %v280_v6  ;;  %v295_v15 = vmul.f32 %v1456_v2, %v281_v7 }
  0x40   : > { %v296_v16 = vmul.f32 %v1456_v2, %v282_v10  ;;  %v297_v17 = vmul.f32 %v1456_v2, %v283_v11  ;;  %v298_v18 = vmul.f32 %v1456_v2, %v284_v12  ;;  %v307_v19 = vrot.slane %v292_v9, 7  ;;  %v381_v20 = vld [vmem:[%s1447_s26 + $0x2] sm:$0x1]  ;;  %v382_v21 = vld [vmem:[%s1447_s26 + $0xa] sm:$0x1]  ;;  %s1117_s16 = sshll.u32 %s1651_s15, 3 }
  0x41   : > { %v310_v22 = vrot.slane %v293_v13, 6  ;;  %v313_v23 = vrot.slane %v294_v14, 5  ;;  %v316_v24 = vrot.slane %v295_v15, 4  ;;  %v383_v25 = vld [vmem:[%s1447_s26 + $0x12] sm:$0x1]  ;;  %v389_v26 = vmul.f32 %v1456_v2, %v381_v20  ;;  %s268_s29 = scalar_lea.vmem %s1865_s0, %s1117_s16  ;;  %s273_s10 = scalar_lea.vmem %s1869_s4, %s1117_s16 }
  0x42   : > { %v309_v27 = vsel %vm308_vm0, %v307_v19, %v291_v8  ;;  %v319_v28 = vrot.slane %v296_v16, 3  ;;  %v322_v29 = vrot.slane %v297_v17, 2  ;;  %v325_v30 = vrot.slane %v298_v18, 1  ;;  %v384_v31 = vld [vmem:[%s1447_s26 + $0x1a] sm:$0x1]  ;;  %s1116_s11 = sshll.u32 %s1443_s18, 3 }
  0x43   : > { %v312_v32 = vsel %vm311_vm1, %v310_v22, %v309_v27  ;;  %v385_v33 = vld [vmem:[%s1447_s26 + $0x22] sm:$0x1]  ;;  %v386_v34 = vld [vmem:[%s1447_s26 + $0x2a] sm:$0x1]  ;;  %v387_v35 = vld [vmem:[%s1447_s26 + $0x32] sm:$0x1]  ;;  %v390_v36 = vmul.f32 %v1456_v2, %v382_v21  ;;  %v391_v37 = vmul.f32 %v1456_v2, %v383_v25  ;;  %v392_v38 = vmul.f32 %v1456_v2, %v384_v31 }
  0x44   : > { %v315_v39 = vsel %vm314_vm2, %v313_v23, %v312_v32  ;;  %v388_v40 = vld [vmem:[%s1447_s26 + $0x3a] sm:$0x1]  ;;  %v393_v41 = vmul.f32 %v1456_v2, %v385_v33  ;;  %v394_v42 = vmul.f32 %v1456_v2, %v386_v34  ;;  %v395_v43 = vmul.f32 %v1456_v2, %v387_v35  ;;  %v336_v44 = vld [vmem:[%s1447_s26 + $0x1] sm:$0x1]  ;;  %v337_v45 = vld [vmem:[%s1447_s26 + $0x9] sm:$0x1] }
  0x45   : > { %v318_v46 = vsel %vm317_vm3, %v316_v24, %v315_v39  ;;  %v396_v47 = vmul.f32 %v1456_v2, %v388_v40  ;;  %v405_v48 = vrot.slane %v390_v36, 7  ;;  %v407_v49 = vrot.slane %v391_v37, 6  ;;  %v338_v50 = vld [vmem:[%s1447_s26 + $0x11] sm:$0x1]  ;;  %v339_v51 = vld [vmem:[%s1447_s26 + $0x19] sm:$0x1] }
  0x46   : > { %v321_v52 = vsel %vm320_vm4, %v319_v28, %v318_v46  ;;  %v409_v53 = vrot.slane %v392_v38, 5  ;;  %v411_v54 = vrot.slane %v393_v41, 4  ;;  %v413_v55 = vrot.slane %v394_v42, 3  ;;  %v340_v56 = vld [vmem:[%s1447_s26 + $0x21] sm:$0x1]  ;;  %s1122_s12 = sshll.u32 %s1360_s3, 7 }
  0x47   : > { %v324_v57 = vsel %vm323_vm5, %v322_v29, %v321_v52  ;;  %v406_v58 = vsel %vm308_vm0, %v405_v48, %v389_v26  ;;  %v415_v59 = vrot.slane %v395_v43, 2  ;;  %v417_v60 = vrot.slane %v396_v47, 1  ;;  %v341_v61 = vld [vmem:[%s1447_s26 + $0x29] sm:$0x1]  ;;  %v342_v62 = vld [vmem:[%s1447_s26 + $0x31] sm:$0x1]  ;;  %s1820_s13 = scalar_lea.hbm %s1870_s5, %s1122_s12 }
  0x48   : > { %v327_v63 = vsel %vm326_vm6, %v325_v30, %v324_v57  ;;  %v408_v0 = vsel %vm311_vm1, %v407_v49, %v406_v58  ;;  %v343_v1 = vld [vmem:[%s1447_s26 + $0x39] sm:$0x1]  ;;  %v344_v3 = vmul.f32 %v1456_v2, %v336_v44  ;;  %v345_v4 = vmul.f32 %v1456_v2, %v337_v45  ;;  %v426_v13 = vld [vmem:[%s1447_s26 + $0x3] sm:$0x1]  ;;  %v427_v14 = vld [vmem:[%s1447_s26 + $0xb] sm:$0x1] }
  0x49   : > { %v330_v5 = vsel %vm329_vm7, %v327_v63, 0.0  ;;  %v410_v6 = vsel %vm314_vm2, %v409_v53, %v408_v0  ;;  %v346_v7 = vmul.f32 %v1456_v2, %v338_v50  ;;  %v347_v8 = vmul.f32 %v1456_v2, %v339_v51  ;;  %v428_v15 = vld [vmem:[%s1447_s26 + $0x13] sm:$0x1]  ;;  %v429_v20 = vld [vmem:[%s1447_s26 + $0x1b] sm:$0x1]  ;;  %s264_s14 = scalar_lea.vmem [#allocation6], %s1116_s11 }
  0x4a   : > { %331 = vadd.xlane.f32.xlu0 %v330_v5  ;;  %v412_v9 = vsel %vm317_vm3, %v411_v54, %v410_v6  ;;  %v348_v10 = vmul.f32 %v1456_v2, %v340_v56  ;;  %v349_v11 = vmul.f32 %v1456_v2, %v341_v61  ;;  %v350_v12 = vmul.f32 %v1456_v2, %v342_v62  ;;  %v430_v21 = vld [vmem:[%s1447_s26 + $0x23] sm:$0x1]  ;;  %v431_v26 = vld [vmem:[%s1447_s26 + $0x2b] sm:$0x1]  ;;  %v432_v31 = vld [vmem:[%s1447_s26 + $0x33] sm:$0x1] }
  0x4b   : > { %v414_v16 = vsel %vm320_vm4, %v413_v55, %v412_v9  ;;  %v351_v17 = vmul.f32 %v1456_v2, %v343_v1  ;;  %v360_v18 = vrot.slane %v345_v4, 7  ;;  %v362_v19 = vrot.slane %v346_v7, 6  ;;  %v433_v32 = vld [vmem:[%s1447_s26 + $0x3b] sm:$0x1]  ;;  %v471_v41 = vld [vmem:[%s1447_s26 + $0x4] sm:$0x1] }
  0x4c   : > { %v416_v22 = vsel %vm323_vm5, %v415_v59, %v414_v16  ;;  %v364_v23 = vrot.slane %v347_v8, 5  ;;  %v366_v24 = vrot.slane %v348_v10, 4  ;;  %v368_v25 = vrot.slane %v349_v11, 3  ;;  %v472_v46 = vld [vmem:[%s1447_s26 + $0xc] sm:$0x1]  ;;  %s1002_s19 = sshll.u32 %s264_s14, 4  ;;  %s1822_s19 = int_to_ptr.vmem [resolvable:$true] %s1002_s19 }
  0x4d   : > { %v418_v27 = vsel %vm326_vm6, %v417_v60, %v416_v22  ;;  %v361_v28 = vsel %vm308_vm0, %v360_v18, %v344_v3  ;;  %v370_v29 = vrot.slane %v350_v12, 2  ;;  %v372_v30 = vrot.slane %v351_v17, 1  ;;  %v473_v47 = vld [vmem:[%s1447_s26 + $0x14] sm:$0x1]  ;;  %v474_v48 = vld [vmem:[%s1447_s26 + $0x1c] sm:$0x1] }
  0x4e   : > { %v420_v33 = vsel %vm329_vm7, %v418_v27, 0.0  ;;  %v363_v34 = vsel %vm311_vm1, %v362_v19, %v361_v28  ;;  %v434_v35 = vmul.f32 %v1456_v2, %v426_v13  ;;  %v435_v36 = vmul.f32 %v1456_v2, %v427_v14  ;;  %v475_v53 = vld [vmem:[%s1447_s26 + $0x24] sm:$0x1]  ;;  %v476_v58 = vld [vmem:[%s1447_s26 + $0x2c] sm:$0x1]  ;;  %s986_s30 = scalar_lea.sflag [#allocation5], %s1443_s18 }
  0x4f   : > { %421 = vadd.xlane.f32.xlu1 %v420_v33  ;;  %v365_v37 = vsel %vm314_vm2, %v364_v23, %v363_v34  ;;  %v436_v38 = vmul.f32 %v1456_v2, %v428_v15  ;;  %v437_v39 = vmul.f32 %v1456_v2, %v429_v20  ;;  %v438_v40 = vmul.f32 %v1456_v2, %v430_v21  ;;  %v477_v62 = vld [vmem:[%s1447_s26 + $0x34] sm:$0x1]  ;;  %v478_v63 = vld [vmem:[%s1447_s26 + $0x3c] sm:$0x1]  ;;  %v516_v10 = vld [vmem:[%s1447_s26 + $0x5] sm:$0x1] }
  0x50   : > { %v367_v42 = vsel %vm317_vm3, %v366_v24, %v365_v37  ;;  %v439_v43 = vmul.f32 %v1456_v2, %v431_v26  ;;  %v440_v44 = vmul.f32 %v1456_v2, %v432_v31  ;;  %v441_v45 = vmul.f32 %v1456_v2, %v433_v32  ;;  %v517_v15 = vld [vmem:[%s1447_s26 + $0xd] sm:$0x1]  ;;  %v518_v16 = vld [vmem:[%s1447_s26 + $0x15] sm:$0x1]  ;;  %v519_v21 = vld [vmem:[%s1447_s26 + $0x1d] sm:$0x1] }
  0x51   : > { %v369_v49 = vsel %vm320_vm4, %v368_v25, %v367_v42  ;;  %v450_v50 = vrot.slane %v435_v36, 7  ;;  %v452_v51 = vrot.slane %v436_v38, 6  ;;  %v454_v52 = vrot.slane %v437_v39, 5  ;;  %v520_v26 = vld [vmem:[%s1447_s26 + $0x25] sm:$0x1]  ;;  %s1226_s15 = scalar_lea.vmem %s1822_s19, 128 }
  0x52   : > { %v371_v54 = vsel %vm323_vm5, %v370_v29, %v369_v49  ;;  %v456_v55 = vrot.slane %v438_v40, 4  ;;  %v458_v56 = vrot.slane %v439_v43, 3  ;;  %v460_v57 = vrot.slane %v440_v44, 2  ;;  %v521_v27 = vld [vmem:[%s1447_s26 + $0x2d] sm:$0x1]  ;;  %p1227_p11 = scmp.ne.s32.totalorder %s1822_s19, %s1226_s15  ;;  %p1877_p12 = scmp.ne.s32.totalorder %s1874_s6, 0 }
  0x53   : > { %v373_v59 = vsel %vm326_vm6, %v372_v30, %v371_v54  ;;  %v451_v60 = vsel %vm308_vm0, %v450_v50, %v434_v35  ;;  %v462_v61 = vrot.slane %v441_v45, 1  ;;  %v479_v0 = vmul.f32 %v1456_v2, %v471_v41  ;;  %v522_v31 = vld [vmem:[%s1447_s26 + $0x35] sm:$0x1]  ;;  %v523_v32 = vld [vmem:[%s1447_s26 + $0x3d] sm:$0x1]  ;;  %s1305_s3 = smov [#allocation6]  }
  0x54   : > { %v375_v1 = vsel %vm329_vm7, %v373_v59, 0.0  ;;  %v453_v3 = vsel %vm311_vm1, %v452_v51, %v451_v60  ;;  %v480_v4 = vmul.f32 %v1456_v2, %v472_v46  ;;  %v481_v5 = vmul.f32 %v1456_v2, %v473_v47  ;;  %v561_v42 = vld [vmem:[%s1447_s26 + $0x6] sm:$0x1]  ;;  %v562_v43 = vld [vmem:[%s1447_s26 + $0xe] sm:$0x1]  ;;  %p1228_p13 = pnand %p1227_p11, %p1877_p12  ;;  %s1230_s16 = sshll.u32 %s1305_s3, 4  ;;  %s1231_s16 = int_to_ptr.vmem [resolvable:$false] %s1230_s16 }
  0x55   : > { %376 = vadd.xlane.f32.xlu0 %v375_v1  ;;  %v455_v6 = vsel %vm314_vm2, %v454_v52, %v453_v3  ;;  %v482_v7 = vmul.f32 %v1456_v2, %v474_v48  ;;  %v483_v8 = vmul.f32 %v1456_v2, %v475_v53  ;;  %v484_v9 = vmul.f32 %v1456_v2, %v476_v58  ;;  %v563_v48 = vld [vmem:[%s1447_s26 + $0x16] sm:$0x1]  ;;  %v564_v49 = vld [vmem:[%s1447_s26 + $0x1e] sm:$0x1]  ;;  %v565_v54 = vld [vmem:[%s1447_s26 + $0x26] sm:$0x1]  ;;  %p1233_p10 = scmp.lt.s32.totalorder %s1822_s19, %s1231_s16 }
  0x56   : > { %v457_v11 = vsel %vm317_vm3, %v456_v55, %v455_v6  ;;  %v485_v12 = vmul.f32 %v1456_v2, %v477_v62  ;;  %v486_v13 = vmul.f32 %v1456_v2, %v478_v63  ;;  %v495_v14 = vrot.slane %v480_v4, 7  ;;  %v566_v59 = vld [vmem:[%s1447_s26 + $0x2e] sm:$0x1]  ;;  %v567_v60 = vld [vmem:[%s1447_s26 + $0x36] sm:$0x1]  ;;  %p1229_p8 = pneg %p1228_p13  ;;  %s1232_s17 = scalar_lea.vmem %s1231_s16, 256 }
  0x57   : > { %v459_v17 = vsel %vm320_vm4, %v458_v56, %v457_v11  ;;  %v497_v18 = vrot.slane %v481_v5, 6  ;;  %v499_v19 = vrot.slane %v482_v7, 5  ;;  %v501_v20 = vrot.slane %v483_v8, 4  ;;  %v606_v11 = vld [vmem:[%s1447_s26 + $0x7] sm:$0x1]  ;;  %p1234_p0 = scmp.lt.s32.totalorder %s1232_s17, %s1226_s15 }
  0x58   : > { %v461_v22 = vsel %vm323_vm5, %v460_v57, %v459_v17  ;;  %v496_v23 = vsel %vm308_vm0, %v495_v14, %v479_v0  ;;  %v503_v24 = vrot.slane %v484_v9, 3  ;;  %v505_v25 = vrot.slane %v485_v12, 2  ;;  %v568_v0 = vld [vmem:[%s1447_s26 + $0x3e] sm:$0x1]  ;;  %v607_v12 = vld [vmem:[%s1447_s26 + $0xf] sm:$0x1] }
  0x59   : > { %v463_v28 = vsel %vm326_vm6, %v462_v61, %v461_v22  ;;  %v498_v29 = vsel %vm311_vm1, %v497_v18, %v496_v23  ;;  %v507_v30 = vrot.slane %v486_v13, 1  ;;  %v524_v33 = vmul.f32 %v1456_v2, %v516_v10  ;;  %v608_v13 = vld [vmem:[%s1447_s26 + $0x17] sm:$0x1]  ;;  %v609_v18 = vld [vmem:[%s1447_s26 + $0x1f] sm:$0x1]  ;;  %p1235_p2 = por %p1234_p0, %p1233_p10 }
  0x5a   : > { %v465_v34 = vsel %vm329_vm7, %v463_v28, 0.0  ;;  %v500_v35 = vsel %vm314_vm2, %v499_v19, %v498_v29  ;;  %v525_v36 = vmul.f32 %v1456_v2, %v517_v15  ;;  %v526_v37 = vmul.f32 %v1456_v2, %v518_v16  ;;  %v610_v19 = vld [vmem:[%s1447_s26 + $0x27] sm:$0x1]  ;;  %v612_v29 = vld [vmem:[%s1447_s26 + $0x37] sm:$0x1] }
  0x5b   : > { %466 = vadd.xlane.f32.xlu1 %v465_v34  ;;  %v502_v38 = vsel %vm317_vm3, %v501_v20, %v500_v35  ;;  %v527_v39 = vmul.f32 %v1456_v2, %v519_v21  ;;  %v528_v40 = vmul.f32 %v1456_v2, %v520_v26  ;;  %v529_v41 = vmul.f32 %v1456_v2, %v521_v27  ;;  %p1236_p4 = pnand %p1235_p2, %p1229_p8 }
  0x5c   : > { %v504_v44 = vsel %vm320_vm4, %v503_v24, %v502_v38  ;;  %v530_v45 = vmul.f32 %v1456_v2, %v522_v31  ;;  %v531_v46 = vmul.f32 %v1456_v2, %v523_v32  ;;  %v540_v47 = vrot.slane %v525_v36, 7  ;;  %v611_v24 = vld [vmem:[%s1447_s26 + $0x2f] sm:$0x1] }
  0x5d   : > { %v506_v50 = vsel %vm323_vm5, %v505_v25, %v504_v44  ;;  %v542_v51 = vrot.slane %v526_v37, 6  ;;  %v544_v52 = vrot.slane %v527_v39, 5  ;;  %v546_v53 = vrot.slane %v528_v40, 4 }
  0x5e   : > { %v508_v55 = vsel %vm326_vm6, %v507_v30, %v506_v50  ;;  %v541_v56 = vsel %vm308_vm0, %v540_v47, %v524_v33  ;;  %v548_v57 = vrot.slane %v529_v41, 3  ;;  %v550_v58 = vrot.slane %v530_v45, 2  ;;  %v613_v30 = vld [vmem:[%s1447_s26 + $0x3f] sm:$0x1] }
  0x5f   : > { %v510_v61 = vsel %vm329_vm7, %v508_v55, 0.0  ;;  %v543_v62 = vsel %vm311_vm1, %v542_v51, %v541_v56  ;;  %v552_v63 = vrot.slane %v531_v46, 1  ;;  %v569_v1 = vmul.f32 %v1456_v2, %v561_v42 }
  0x60   : > { %511 = vadd.xlane.f32.xlu0 %v510_v61  ;;  %v545_v3 = vsel %vm314_vm2, %v544_v52, %v543_v62  ;;  %v570_v4 = vmul.f32 %v1456_v2, %v562_v43  ;;  %v571_v5 = vmul.f32 %v1456_v2, %v563_v48  ;;  %v572_v6 = vmul.f32 %v1456_v2, %v564_v49  ;;  %v662_v61 = vld [vmem:[%s268_s29] sm:$0xff] }
  0x61   : > { %v547_v7 = vsel %vm317_vm3, %v546_v53, %v545_v3  ;;  %v573_v8 = vmul.f32 %v1456_v2, %v565_v54  ;;  %v574_v9 = vmul.f32 %v1456_v2, %v566_v59  ;;  %v575_v10 = vmul.f32 %v1456_v2, %v567_v60  ;;  %v1120_v62 = vld [vmem:[#allocation2] ss:$0 sm:$0xff] }
  0x62   : > { %v549_v14 = vsel %vm320_vm4, %v548_v57, %v547_v7  ;;  %v576_v15 = vmul.f32 %v1456_v2, %v568_v0  ;;  %v585_v16 = vrot.slane %v570_v4, 7  ;;  %v587_v17 = vrot.slane %v571_v5, 6 }
  0x63   : > { %v551_v20 = vsel %vm323_vm5, %v550_v58, %v549_v14  ;;  %v589_v21 = vrot.slane %v572_v6, 5  ;;  %v591_v22 = vrot.slane %v573_v8, 4  ;;  %v593_v23 = vrot.slane %v574_v9, 3 }
  0x64   : > { %v553_v25 = vsel %vm326_vm6, %v552_v63, %v551_v20  ;;  %v586_v26 = vsel %vm308_vm0, %v585_v16, %v569_v1  ;;  %v595_v27 = vrot.slane %v575_v10, 2  ;;  %v597_v28 = vrot.slane %v576_v15, 1 }
  0x65   : > { %v555_v31 = vsel %vm329_vm7, %v553_v25, 0.0  ;;  %v588_v32 = vsel %vm311_vm1, %v587_v17, %v586_v26  ;;  %v614_v33 = vmul.f32 %v1456_v2, %v606_v11  ;;  %v615_v34 = vmul.f32 %v1456_v2, %v607_v12 }
  0x66   : > { %556 = vadd.xlane.f32.xlu1 %v555_v31  ;;  %v590_v35 = vsel %vm314_vm2, %v589_v21, %v588_v32  ;;  %v616_v36 = vmul.f32 %v1456_v2, %v608_v13  ;;  %v617_v37 = vmul.f32 %v1456_v2, %v609_v18  ;;  %v618_v38 = vmul.f32 %v1456_v2, %v610_v19 }
  0x67   : > { %v592_v39 = vsel %vm317_vm3, %v591_v22, %v590_v35  ;;  %v619_v40 = vmul.f32 %v1456_v2, %v611_v24  ;;  %v620_v41 = vmul.f32 %v1456_v2, %v612_v29  ;;  %v621_v42 = vmul.f32 %v1456_v2, %v613_v30 }
  0x68   : > { %v594_v43 = vsel %vm320_vm4, %v593_v23, %v592_v39  ;;  %v630_v44 = vrot.slane %v615_v34, 7  ;;  %v632_v45 = vrot.slane %v616_v36, 6  ;;  %v634_v46 = vrot.slane %v617_v37, 5 }
  0x69   : > { %v596_v47 = vsel %vm323_vm5, %v595_v27, %v594_v43  ;;  %v636_v48 = vrot.slane %v618_v38, 4  ;;  %v638_v51 = vrot.slane %v619_v40, 3  ;;  %v640_v2 = vrot.slane %v620_v41, 2 }
  0x6a   : > { %v598_v49 = vsel %vm326_vm6, %v597_v28, %v596_v47  ;;  %v631_v50 = vsel %vm308_vm0, %v630_v44, %v614_v33  ;;  %v642_v55 = vrot.slane %v621_v42, 1  ;;  %vm663_vm8 = vcmp.gt.s32.totalorder %v662_v61, 1  ;;  %v684_v47 = vld [vmem:[%s1447_s26 + $0x8] sm:$0x1] }
  0x6b   : > { %v600_v52 = vsel %vm329_vm7, %v598_v49, 0.0  ;;  %v633_v53 = vsel %vm311_vm1, %v632_v45, %v631_v50  ;;  %v664_v63 = vsel %vm663_vm8, %v662_v61, 1  ;;  %v275_v0 = vlaneseq  ;;  %v759_v49 = vld [vmem:[%s1447_s26 + $0xa] sm:$0x1]  ;;  %v797_v50 = vld [vmem:[%s1447_s26 + $0x13] sm:$0x1] }
  0x6c   : > { %601 = vadd.xlane.f32.xlu0 %v600_v52  ;;  %v635_v54 = vsel %vm314_vm2, %v634_v46, %v633_v53  ;;  %v1298_v36 = vmov 3   ;;  %v1299_v40 = vmov 1   ;;  %v1300_v41 = vmov 7   ;;  %v722_v46 = vld [vmem:[%s1447_s26 + $0x9] sm:$0x1] }
  0x6d   : > { %v637_v56 = vsel %vm317_vm3, %v636_v48, %v635_v54  ;;  %v276_v3 = vand.u32 127, %v275_v0  ;;  %v1301_v42 = vmov 2   ;;  %v1302_v43 = vmov 4   ;;  %v796_v48 = vld [vmem:[%s1447_s26 + $0xb] sm:$0x1] }
  0x6e   : > { %v639_v57 = vsel %vm320_vm4, %v638_v51, %v637_v56  ;;  %v1303_v44 = vmov 5   ;;  %v1304_v45 = vmov 6   ;;  %v798_v51 = vld [vmem:[%s1447_s26 + $0x1b] sm:$0x1]  ;;  %v723_v52 = vld [vmem:[%s1447_s26 + $0x11] sm:$0x1] }
  0x6f   : > { %v641_v58 = vsel %vm323_vm5, %v640_v2, %v639_v57  ;;  %vm378_vm9 = vcmp.eq.s32.totalorder %v276_v3, 1  ;;  %vm333_vm10 = vcmp.eq.s32.totalorder %v276_v3, 0  ;;  %vm423_vm11 = vcmp.eq.s32.totalorder %v276_v3, 2  ;;  %v795_v2 = vld [vmem:[%s1447_s26 + $0x3] sm:$0x1] }
  0x70   : > { %v643_v59 = vsel %vm326_vm6, %v642_v55, %v641_v58  ;;  %vm468_vm12 = vcmp.eq.s32.totalorder %v276_v3, 3  ;;  %vm513_vm13 = vcmp.eq.s32.totalorder %v276_v3, 4  ;;  %vm558_vm14 = vcmp.eq.s32.totalorder %v276_v3, 5  ;;  %v1677_v54 = vld [vmem:[%s1447_s26 + $0x23] sm:$0x1] }
  0x71   : > { %v645_v60 = vsel %vm329_vm7, %v643_v59, 0.0  ;;  %vm603_vm15 = vcmp.eq.s32.totalorder %v276_v3, 6  ;;  %vm648_vm8 = vcmp.eq.s32.totalorder %v276_v3, 7  ;;  %v741_v53 = vrot.slane %v722_v46, 7  ;;  %v685_v55 = vld [vmem:[%s1447_s26 + $0x10] sm:$0x1] }
  0x72   : > { %646 = vadd.xlane.f32.xlu1 %v645_v60  ;;  %v704_v56 = vrot.slane %v684_v47, 7  ;;  %v721_v57 = vld [vmem:[%s1447_s26 + $0x1] sm:$0x1]  ;;  %v1682_v58 = vld [vmem:[%s1447_s26 + $0x2b] sm:$0x1]  ;;  %v815_v59 = vrot.slane %v796_v48, 7 }
  0x73   : > { %v683_v60 = vld [vmem:[%s1447_s26] sm:$0x1]  ;;  %v760_v61 = vld [vmem:[%s1447_s26 + $0x12] sm:$0x1]  ;;  %v724_v0 = vld [vmem:[%s1447_s26 + $0x19] sm:$0x1] }
  0x74   : > { %v907_v46 = vld [vmem:[%s1447_s26 + $0xe] sm:$0x1] }
  0x82   : > { %658 = vperm.xlu0 %1182, %v1120_v62   ;;  %v778_v62 = vrot.slane %v759_v49, 7 }
  0x83   : > { %666 = vperm.xlu1 %1183, %v664_v63   ;;  %v1687_v63 = vld [vmem:[%s1447_s26 + $0x33] sm:$0x1] }
  0x86   : > { %1186 = vset.pattern.permute.xlu0 %v1298_v36  ;;  %v727_v36 = vld [vmem:[%s1447_s26 + $0x31] sm:$0x1] }
  0xd7   : > { %v332_v1 = vpop.xlane.xlu0 %331 }
  0xd8   : > { %v334_v7 = vsel %vm333_vm10, %v332_v1, 0.0  ;;  %v743_v1 = vrot.slane %v723_v52, 6  ;;  %v871_v52 = vld [vmem:[%s1447_s26 + $0x15] sm:$0x1] }
  0xdc   : > { %v422_v5 = vpop.xlane.xlu1 %421 }
  0xdd   : > { %v424_v9 = vsel %vm423_vm11, %v422_v5, 0.0  ;;  %v686_v5 = vld [vmem:[%s1447_s26 + $0x18] sm:$0x1] }
  0xe2   : > { %v377_v4 = vpop.xlane.xlu0 %376 }
  0xe3   : > { %v379_v6 = vsel %vm378_vm9, %v377_v4, 0.0  ;;  %vm670_vm9 = vcmask 64512   ;;  %v1692_v4 = vld [vmem:[%s1447_s26 + $0x3b] sm:$0x1] }
  0xe4   : > { %v380_v8 = vadd.f32 %v379_v6, %v334_v7  ;;  %v706_v6 = vrot.slane %v685_v55, 6  ;;  %v742_v7 = vsel %vm308_vm0, %v741_v53, %v721_v57  ;;  %v835_v55 = vld [vmem:[%s1447_s26 + $0x1c] sm:$0x1]  ;;  %v869_v57 = vld [vmem:[%s1447_s26 + $0x5] sm:$0x1] }
  0xe6   : > { %v425_v11 = vadd.f32 %v424_v9, %v380_v8  ;;  %v817_v8 = vrot.slane %v797_v50, 6  ;;  %v819_v9 = vrot.slane %v798_v51, 5  ;;  %v764_v50 = vld [vmem:[%s1447_s26 + $0x32] sm:$0x1] }
  0xe8   : > { %v467_v10 = vpop.xlane.xlu1 %466 }
  0xe9   : > { %v469_v12 = vsel %vm468_vm12, %v467_v10, 0.0  ;;  %v705_v10 = vsel %vm308_vm0, %v704_v56, %v683_v60 }
  0xea   : > { %v470_v13 = vadd.f32 %v469_v12, %v425_v11  ;;  %v761_v11 = vld [vmem:[%s1447_s26 + $0x1a] sm:$0x1]  ;;  %v780_v12 = vrot.slane %v760_v61, 6 }
  0xed   : > { %v512_v14 = vpop.xlane.xlu0 %511 }
  0xee   : > { %v514_v16 = vsel %vm513_vm13, %v512_v14, 0.0  ;;  %v821_v14 = vrot.slane %v1677_v54, 4 }
  0xef   : > { %v515_v17 = vadd.f32 %v514_v16, %v470_v13  ;;  %v816_v13 = vsel %vm308_vm0, %v815_v59, %v795_v2  ;;  %v725_v16 = vld [vmem:[%s1447_s26 + $0x21] sm:$0x1] }
  0xf3   : > { %v557_v15 = vpop.xlane.xlu1 %556 }
  0xf4   : > { %v559_v18 = vsel %vm558_vm14, %v557_v15, 0.0  ;;  %v687_v15 = vld [vmem:[%s1447_s26 + $0x20] sm:$0x1] }
  0xf5   : > { %v560_v19 = vadd.f32 %v559_v18, %v515_v17  ;;  %v745_v17 = vrot.slane %v724_v0, 5  ;;  %v908_v0 = vld [vmem:[%s1447_s26 + $0x16] sm:$0x1] }
  0xf9   : > { %v602_v20 = vpop.xlane.xlu0 %601 }
  0xfa   : > { %v604_v21 = vsel %vm603_vm15, %v602_v20, 0.0  ;;  %v688_v20 = vld [vmem:[%s1447_s26 + $0x28] sm:$0x1] }
  0xfb   : > { %v605_v22 = vadd.f32 %v604_v21, %v560_v19  ;;  %v823_v19 = vrot.slane %v1682_v58, 3  ;;  %v708_v21 = vrot.slane %v686_v5, 5  ;;  %v751_v5 = vrot.slane %v727_v36, 2 }
  0xff   : > { %v647_v23 = vpop.xlane.xlu1 %646 }
 0x100   : > { %v649_v24 = vsel %vm648_vm8, %v647_v23, 0.0  ;;  %v833_v23 = vld [vmem:[%s1447_s26 + $0xc] sm:$0x1] }
 0x101   : > { %v650_v25 = vadd.f32 %v649_v24, %v605_v22  ;;  %v659_v26 = vpop.permute.xlu0 %658  ;;  %v744_v22 = vsel %vm311_vm1, %v743_v1, %v742_v7  ;;  %v825_v24 = vrot.slane %v1687_v63, 2  ;;  %v926_v1 = vrot.slane %v907_v46, 7 }
 0x102   : > { %v891_v7 = vrot.slane %v871_v52, 6  ;;  %v838_v52 = vld [vmem:[%s1447_s26 + $0x34] sm:$0x1] }
 0x103   : > { %v661_v27 = vadd.f32 %v659_v26, %v650_v25  ;;  %v667_v28 = vpop.permute.xlu1 %666  ;;  %v1709_v25 = vld [vmem:[%s1447_s26 + $0x30] sm:$0x1]  ;;  %v707_v26 = vsel %vm311_vm1, %v706_v6, %v705_v10  ;;  %v690_v10 = vld [vmem:[%s1447_s26 + $0x38] sm:$0x1] }
 0x104   : > { %vm668_vm10 = vcmp.lt.s32.totalorder %v276_v3, %v667_v28  ;;  %v758_v3 = vld [vmem:[%s1447_s26 + $0x2] sm:$0x1]  ;;  %v782_v28 = vrot.slane %v761_v11, 5  ;;  %v714_v2 = vrot.slane %v1709_v25, 2 }
 0x105   : > { %v669_v29 = vsel %vm668_vm10, %v661_v27, -inf  ;;  %v779_v18 = vsel %vm308_vm0, %v778_v62, %v758_v3  ;;  %v762_v27 = vld [vmem:[%s1447_s26 + $0x22] sm:$0x1]  ;;  %v872_v62 = vld [vmem:[%s1447_s26 + $0x1d] sm:$0x1] }
 0x106   : > { %v671_v30 = vsel %vm670_vm9, %v669_v29, -inf }
 0x107   : > { %672 = vmax.xlane.f32.xlu1 %v671_v30  ;;  %v827_v30 = vrot.slane %v1692_v4, 1 }
 0x194   : > { %v673_v31 = vpop.xlane.xlu1 %672 }
 0x195   : > { %v674_v32 = vsub.f32 %v669_v29, %v673_v31  ;;  %v818_v29 = vsel %vm311_vm1, %v817_v8, %v816_v13  ;;  %v726_v31 = vld [vmem:[%s1447_s26 + $0x29] sm:$0x1]  ;;  %v906_v8 = vld [vmem:[%s1447_s26 + $0x6] sm:$0x1]  ;;  %v836_v13 = vld [vmem:[%s1447_s26 + $0x24] sm:$0x1] }
 0x196   : > { %v820_v47 = vsel %vm314_vm2, %v819_v9, %v818_v29  ;;  %v749_v49 = vrot.slane %v726_v31, 3  ;;  %v944_v9 = vld [vmem:[%s1447_s26 + $0xf] sm:$0x1]  ;;  %v945_v29 = vld [vmem:[%s1447_s26 + $0x17] sm:$0x1] }
 0x197   : > { %v675_v33 = vmul.f32 1.442695, %v674_v32  ;;  %v747_v32 = vrot.slane %v725_v16, 4  ;;  %v822_v3 = vsel %vm317_vm3, %v821_v14, %v820_v47  ;;  %v963_v31 = vrot.slane %v944_v9, 7  ;;  %v946_v47 = vld [vmem:[%s1447_s26 + $0x1f] sm:$0x1] }
 0x199   : > { %1192 = vpow2.f32 %v675_v33  ;;  %v781_v33 = vsel %vm311_vm1, %v780_v12, %v779_v18  ;;  %v765_v18 = vld [vmem:[%s1447_s26 + $0x3a] sm:$0x1] }
 0x19a   : > { %v783_v51 = vsel %vm314_vm2, %v782_v28, %v781_v33  ;;  %v927_v28 = vsel %vm308_vm0, %v926_v1, %v906_v8 }
 0x1a3   : > { %v1193_v34 = vpop.eup %1192 }
 0x1a4   : > { %v677_v35 = vsel %vm670_vm9, %v1193_v34, 0.0 }
 0x1a5   : > { %678 = vadd.xlane.f32.xlu0 %v677_v35  ;;  %v710_v35 = vrot.slane %v687_v15, 4  ;;  %v856_v15 = vrot.slane %v835_v55, 5  ;;  %v824_v55 = vsel %vm320_vm4, %v823_v19, %v822_v3  ;;  %v862_v19 = vrot.slane %v838_v52, 2 }
 0x1a6   : > { %v826_v9 = vsel %vm323_vm5, %v825_v24, %v824_v55 }
 0x232   : > { %v679_v37 = vpop.xlane.xlu0 %678 }
 0x233   : > { %1194 = vrcp.f32 %v679_v37  ;;  %v746_v37 = vsel %vm314_vm2, %v745_v17, %v744_v22  ;;  %v909_v22 = vld [vmem:[%s1447_s26 + $0x1e] sm:$0x1] }
 0x234   : > { %v748_v54 = vsel %vm317_vm3, %v747_v32, %v746_v37  ;;  %v716_v32 = vrot.slane %v690_v10, 1  ;;  %v943_v37 = vld [vmem:[%s1447_s26 + $0x7] sm:$0x1] }
 0x235   : > { %v750_v11 = vsel %vm320_vm4, %v749_v49, %v748_v54  ;;  %v965_v49 = vrot.slane %v945_v29, 6  ;;  %v964_v54 = vsel %vm308_vm0, %v963_v31, %v943_v37 }
 0x236   : > { %v752_v33 = vsel %vm323_vm5, %v751_v5, %v750_v11  ;;  %v947_v5 = vld [vmem:[%s1447_s26 + $0x27] sm:$0x1] }
 0x237   : > { %v966_v8 = vsel %vm311_vm1, %v965_v49, %v964_v54 }
 0x23d   : > { %v1195_v38 = vpop.eup %1194 }
 0x23e   : > { %v681_v39 = vmul.f32 %v1195_v38, %v1193_v34  ;;  %v870_v34 = vld [vmem:[%s1447_s26 + $0xd] sm:$0x1]  ;;  %v763_v38 = vld [vmem:[%s1447_s26 + $0x2a] sm:$0x1] }
 0x23f   : > { %v889_v53 = vrot.slane %v870_v34, 7  ;;  %v786_v60 = vrot.slane %v763_v38, 3  ;;  %v837_v34 = vld [vmem:[%s1447_s26 + $0x2c] sm:$0x1] }
 0x240   : > { %682 = vst.msk [vmem:[%s273_s10] sm:$0xff] %vm670_vm9, %v681_v39  ;;  %804 = vperm.xlu0 %1186, %v681_v39   ;;  %693 = vperm.xlu1 %1183, %v681_v39  }
 0x241   : > { %v890_v16 = vsel %vm308_vm0, %v889_v53, %v869_v57  ;;  %v860_v53 = vrot.slane %v837_v34, 3 }
 0x242   : > { %v892_v36 = vsel %vm311_vm1, %v891_v7, %v890_v16  ;;  %v839_v7 = vld [vmem:[%s1447_s26 + $0x3c] sm:$0x1] }
 0x244   : > { %1184 = vset.pattern.permute.xlu1 %v1299_v40  ;;  %1191 = vset.pattern.permute.xlu0 %v1300_v41  ;;  %v852_v40 = vrot.slane %v833_v23, 7  ;;  %v928_v23 = vrot.slane %v908_v0, 6 }
 0x245   : > { %730 = vperm.xlu1 %1184, %v681_v39  }
 0x246   : > { %v929_v46 = vsel %vm311_vm1, %v928_v23, %v927_v28 }
 0x249   : > { %1185 = vset.pattern.permute.xlu1 %v1301_v42  ;;  %v712_v42 = vrot.slane %v688_v20, 3  ;;  %v788_v20 = vrot.slane %v764_v50, 2 }
 0x24a   : > { %767 = vperm.xlu1 %1185, %v681_v39  }
 0x24e   : > { %1187 = vset.pattern.permute.xlu1 %v1302_v43  ;;  %v1724_v43 = vld [vmem:[%s1447_s26 + $0x39] sm:$0x1] }
 0x24f   : > { %841 = vperm.xlu1 %1187, %v681_v39   ;;  %v753_v12 = vrot.slane %v1724_v43, 1 }
 0x251   : > { %v754_v50 = vsel %vm326_vm6, %v753_v12, %v752_v33  ;;  %v912_v12 = vld [vmem:[%s1447_s26 + $0x36] sm:$0x1] }
 0x253   : > { %1188 = vset.pattern.permute.xlu1 %v1303_v44  ;;  %v784_v44 = vrot.slane %v762_v27, 4  ;;  %v893_v27 = vrot.slane %v872_v62, 5 }
 0x254   : > { %878 = vperm.xlu1 %1188, %v681_v39  }
 0x255   : > { %v785_v6 = vsel %vm317_vm3, %v784_v44, %v783_v51  ;;  %v874_v44 = vld [vmem:[%s1447_s26 + $0x2d] sm:$0x1] }
 0x256   : > { %v787_v25 = vsel %vm320_vm4, %v786_v60, %v785_v6  ;;  %v911_v60 = vld [vmem:[%s1447_s26 + $0x2e] sm:$0x1]  ;;  %v897_v0 = vrot.slane %v874_v44, 3  ;;  %v967_v6 = vrot.slane %v946_v47, 5 }
 0x257   : > { %v789_v43 = vsel %vm323_vm5, %v788_v20, %v787_v25  ;;  %v948_v20 = vld [vmem:[%s1447_s26 + $0x2f] sm:$0x1] }
 0x258   : > { %1189 = vset.pattern.permute.xlu1 %v1304_v45  ;;  %v832_v45 = vld [vmem:[%s1447_s26 + $0x4] sm:$0x1]  ;;  %v968_v24 = vsel %vm314_vm2, %v967_v6, %v966_v8  ;;  %v971_v33 = vrot.slane %v948_v20, 3 }
 0x259   : > { %915 = vperm.xlu1 %1189, %v681_v39   ;;  %v853_v61 = vsel %vm308_vm0, %v852_v40, %v832_v45 }
 0x25d   : > { %1190 = vset.pattern.permute.xlu1 %v1300_v41  ;;  %v709_v41 = vsel %vm314_vm2, %v708_v21, %v707_v26  ;;  %v873_v26 = vld [vmem:[%s1447_s26 + $0x25] sm:$0x1] }
 0x25e   : > { %952 = vperm.xlu1 %1190, %v681_v39   ;;  %v834_v39 = vld [vmem:[%s1447_s26 + $0x14] sm:$0x1]  ;;  %v711_v59 = vsel %vm317_vm3, %v710_v35, %v709_v41  ;;  %v858_v35 = vrot.slane %v836_v13, 4  ;;  %v910_v41 = vld [vmem:[%s1447_s26 + $0x26] sm:$0x1]  ;;  %v895_v45 = vrot.slane %v873_v26, 4 }
 0x25f   : > { %v854_v56 = vrot.slane %v834_v39, 6  ;;  %v713_v14 = vsel %vm320_vm4, %v712_v42, %v711_v59  ;;  %v790_v39 = vrot.slane %v765_v18, 1  ;;  %v930_v42 = vrot.slane %v909_v22, 5  ;;  %v875_v59 = vld [vmem:[%s1447_s26 + $0x35] sm:$0x1] }
 0x260   : > { %v715_v38 = vsel %vm323_vm5, %v714_v2, %v713_v14  ;;  %v894_v2 = vsel %vm314_vm2, %v893_v27, %v892_v36  ;;  %v899_v11 = vrot.slane %v875_v59, 2  ;;  %v934_v13 = vrot.slane %v911_v60, 3  ;;  %v913_v26 = vld [vmem:[%s1447_s26 + $0x3e] sm:$0x1] }
 0x261   : > { %v855_v21 = vsel %vm311_vm1, %v854_v56, %v853_v61  ;;  %v717_v56 = vsel %vm326_vm6, %v716_v32, %v715_v38  ;;  %v932_v61 = vrot.slane %v910_v41, 4  ;;  %v791_v62 = vsel %vm326_vm6, %v790_v39, %v789_v43  ;;  %v949_v32 = vld [vmem:[%s1447_s26 + $0x37] sm:$0x1] }
 0x262   : > { %v857_v40 = vsel %vm314_vm2, %v856_v15, %v855_v21  ;;  %v931_v1 = vsel %vm314_vm2, %v930_v42, %v929_v46  ;;  %v896_v3 = vsel %vm317_vm3, %v895_v45, %v894_v2  ;;  %v969_v21 = vrot.slane %v947_v5, 4 }
 0x263   : > { %v859_v57 = vsel %vm317_vm3, %v858_v35, %v857_v40  ;;  %v933_v18 = vsel %vm317_vm3, %v932_v61, %v931_v1  ;;  %v864_v22 = vrot.slane %v839_v7, 1  ;;  %v898_v63 = vsel %vm320_vm4, %v897_v0, %v896_v3 }
 0x264   : > { %v861_v10 = vsel %vm320_vm4, %v860_v53, %v859_v57  ;;  %v936_v27 = vrot.slane %v912_v12, 2  ;;  %v935_v31 = vsel %vm320_vm4, %v934_v13, %v933_v18  ;;  %v900_v35 = vsel %vm323_vm5, %v899_v11, %v898_v63 }
 0x265   : > { %v863_v25 = vsel %vm323_vm5, %v862_v19, %v861_v10  ;;  %v970_v36 = vsel %vm317_vm3, %v969_v21, %v968_v24  ;;  %v938_v39 = vrot.slane %v913_v26, 1  ;;  %v973_v41 = vrot.slane %v949_v32, 2 }
 0x266   : > { %v865_v37 = vsel %vm326_vm6, %v864_v22, %v863_v25  ;;  %v937_v4 = vsel %vm323_vm5, %v936_v27, %v935_v31  ;;  %v972_v43 = vsel %vm320_vm4, %v971_v33, %v970_v36 }
 0x267   : > { %v939_v46 = vsel %vm326_vm6, %v938_v39, %v937_v4 }
 0x2bf   : > { %v1729_v48 = vpop.permute.xlu1 %693  ;;  %v805_v28 = vpop.permute.xlu0 %804 }
 0x2c0   : > { %v719_v15 = vmul.f32 %v717_v56, %v1729_v48  ;;  %v828_v48 = vsel %vm326_vm6, %v827_v30, %v826_v9  ;;  %v950_v30 = vld [vmem:[%s1447_s26 + $0x3f] sm:$0x1] }
 0x2c1   : > { %v830_v40 = vmul.f32 %v828_v48, %v805_v28  ;;  %v975_v47 = vrot.slane %v950_v30, 1 }
 0x2c4   : > { %v731_v17 = vpop.permute.xlu1 %730 }
 0x2c5   : > { %v756_v58 = vmul.f32 %v754_v50, %v731_v17  ;;  %v876_v17 = vld [vmem:[%s1447_s26 + $0x3d] sm:$0x1] }
 0x2c6   : > { %v901_v29 = vrot.slane %v876_v17, 1 }
 0x2c7   : > { %v757_v23 = vadd.f32 %v756_v58, %v719_v15 }
 0x2c8   : > { %v902_v42 = vsel %vm326_vm6, %v901_v29, %v900_v35 }
 0x2c9   : > { %v768_v51 = vpop.permute.xlu1 %767 }
 0x2ca   : > { %v793_v16 = vmul.f32 %v791_v62, %v768_v51  ;;  %v974_v51 = vsel %vm323_vm5, %v973_v41, %v972_v43 }
 0x2cb   : > { %v976_v2 = vsel %vm326_vm6, %v975_v47, %v974_v51 }
 0x2cc   : > { %v794_v34 = vadd.f32 %v793_v16, %v757_v23 }
 0x2ce   : > { %v842_v14 = vpop.permute.xlu1 %841  ;;  %v831_v44 = vadd.f32 %v830_v40, %v794_v34 }
 0x2cf   : > { %v867_v45 = vmul.f32 %v865_v37, %v842_v14 }
 0x2d1   : > { %v868_v52 = vadd.f32 %v867_v45, %v831_v44 }
 0x2d3   : > { %v879_v38 = vpop.permute.xlu1 %878 }
 0x2d4   : > { %v904_v49 = vmul.f32 %v902_v42, %v879_v38 }
 0x2d6   : > { %v905_v54 = vadd.f32 %v904_v49, %v868_v52 }
 0x2d8   : > { %v916_v50 = vpop.permute.xlu1 %915 }
 0x2d9   : > { %v941_v53 = vmul.f32 %v939_v46, %v916_v50 }
 0x2db   : > { %v942_v56 = vadd.f32 %v941_v53, %v905_v54 }
 0x2dd   : > { %v953_v55 = vpop.permute.xlu1 %952 }
 0x2de   : > { %v978_v57 = vmul.f32 %v976_v2, %v953_v55 }
 0x2e0   : > { %v979_v59 = vadd.f32 %v978_v57, %v942_v56 }
 0x2e2   : > { %980 = vst.msk [vmem:[%s264_s14] sm:$0xff] %vm329_vm7, %v979_v59 }
 0x2e3   : > { %1239 = shalt.err (!%p1236_p4)
}
 0x2e4   : > { %s1240_s18 = scalar_lea.hbm %s1820_s13, 128  ;;  %s1244_s8 = scalar_lea.hbm %s1870_s5, 256 }
 0x2e5   : > { %p1241_p5 = scmp.ne.s32.totalorder %s1820_s13, %s1240_s18  ;;  %p1245_p1 = scmp.lt.u32.totalorder %s1820_s13, %s1870_s5 }
 0x2e6   : > { %p1246_p3 = scmp.lt.u32.totalorder %s1244_s8, %s1240_s18  ;;  %p1248_p11 = scmp.lt.u32.totalorder %s1240_s18, %s1820_s13 }
 0x2e7   : > { %p1242_p7 = pnand %p1241_p5, %p1877_p12 }
 0x2e8   : > { %p1247_p6 = por %p1246_p3, %p1245_p1 }
 0x2e9   : > { %p1243_p9 = pneg %p1242_p7 }
 0x2ea   : > { %p1249_p13 = por %p1248_p11, %p1247_p6 }
 0x2ec   : > { %p1250_p8 = pnand %p1249_p13, %p1243_p9 }
 0x2ee   : > { %1253 = shalt.err (!%p1250_p8)
}
 0x2ef   : > { %1128 = dma.vmem_to_hbm [thread:$0]  (%p1877_p12), %s1822_s19, 128, %s1820_s13, %s986_s30  }
 0x2f0 PF: > { %s1021_s11 = sand.u32 1, %s1280_s20   ;;  %p1878_p10 = scmp.ne.s32.totalorder %s1875_s7, 0 }
 0x2f1   : > { %p1879_p0 = scmp.ge.s32.totalorder %s1292_s23, 2  ;;  %s1022_s12 = scalar_lea.sflag [#allocation5], %s1021_s11 }
 0x2f3   : > { %p1135_p2 = pnand %p1879_p0, %p1878_p10 }
 0x2f5   : > { %1275 = dma.done.wait (!%p1135_p2), %s1022_s12, 128  }
 0x2f6   : > { %1277 = vsyncadd (!%p1135_p2), %s1022_s12, 4294967168  ;;  %p21_p4 = scmp.ge.s32.totalorder %s1364_s25, 4   ;;  %s1880_s20 = smov %s1284_s21 }
 0x2f7   : > { %s1881_s21 = smov %s1288_s22  ;;  %s1882_s22 = smov %s1376_s28 }
 0x2f8   : > { %s1883_s23 = smov %s1364_s25  ;;  %23 = sbr.rel (!%p21_p4) target bundleno = 8 (0x8), region = 96 }
 0x2ff   :  { %1027 = vsyncpa [#allocation4], 1 }
 0x300   :  { %1029 = vsyncpa [#allocation4 + $0x1], 1 }
 0x301   :  { %1030 = vsyncpa [#allocation5], 1 }
 0x302   :  { %1032 = vsyncpa [#allocation5 + $0x1], 1 }

</bundles_post_ra>
